<compile_context>
chip_gen: v7x
topology: tpu7x:2x2x1
jax: 0.10.0
libtpu: 0.0.40
codegen_flags: <defaults>
</compile_context>

<pallas_src>
import jax
import jax.numpy as jnp
import numpy as np
from jax.experimental import pallas as pl
from jax.experimental.pallas import tpu as pltpu

KH = 5  # 5x5 convolutions

_WEIGHT_ORDER = ("t1", "b1", "s1e", "s1o", "t2", "b2", "s2e", "s2o",
                 "g1", "fb1", "w2", "fb2", "w3", "fb3")

# True  -> pltpu.roll(x, +1, axis) moves data toward HIGHER indices (np.roll).
# Resolved once at runtime (outside jit) by a tiny probe kernel so the conv row
# shifts are robust to either convention.
_ROLL_TO_HIGH = None


def _resolve_roll_convention():
    global _ROLL_TO_HIGH
    if _ROLL_TO_HIGH is not None:
        return _ROLL_TO_HIGH

    def probe(x_ref, o_ref):
        o_ref[...] = pltpu.roll(x_ref[...], 1, 0)

    x = jnp.broadcast_to(jnp.arange(8, dtype=jnp.float32)[:, None], (8, 128))
    y = pl.pallas_call(
        probe, out_shape=jax.ShapeDtypeStruct((8, 128), jnp.float32))(x)
    v = float(y[0, 0])
    if v == 7.0:
        _ROLL_TO_HIGH = True        # np.roll semantics
    elif v == 1.0:
        _ROLL_TO_HIGH = False
    else:
        raise RuntimeError(f"unexpected pltpu.roll probe value: {v}")
    return _ROLL_TO_HIGH


def _rows_up(v, dh):
    """s[r] = v[(r + dh) % R]: shift rows toward lower indices (circular).

    Wrapped rows only land on per-image junk rows (see kernel comments)."""
    if dh == 0:
        return v
    r = v.shape[0]
    shift = (r - dh) if _ROLL_TO_HIGH else dh
    return pltpu.roll(v, shift, 0)


# ----------------------------------------------------------------------------
# Fused LeNet5 kernel: `block_b` images per grid step, everything in VMEM.
# ----------------------------------------------------------------------------
def _lenet5_kernel(x_ref,
                   t1_ref, b1_ref, s1e_ref, s1o_ref,
                   t2_ref, b2_ref, s2e_ref, s2o_ref,
                   g1_ref, fb1_ref, w2_ref, fb2_ref, w3_ref, fb3_ref,
                   o_ref):
    f32, bf16 = jnp.float32, jnp.bfloat16
    batch, h_in, wc_in = x_ref.shape

    def conv(rows, t_ref, b_ref):
        """Valid 5x5 conv + bias + ReLU on (R, Win*Cin) f32 flat rows.

        out[r] = relu(b + sum_dh rows[r + dh] @ T[dh]); T[dh] is the per-row-
        offset Toeplitz matrix.  Rows 0..Hout-1 of each image are valid; higher
        rows (including roll wrap-around) are junk and never feed a valid row."""
        acc = jnp.dot(rows.astype(bf16), t_ref[0], preferred_element_type=f32)
        for dh in range(1, KH):
            acc = acc + jnp.dot(_rows_up(rows, dh).astype(bf16), t_ref[dh],
                                preferred_element_type=f32)
        return jnp.maximum(acc + b_ref[...], 0.0)

    def pool(rows, se_ref, so_ref):
        """2x2 / stride-2 max pool on (R, W*C) f32 rows -> (R//2, (W//2)*C)."""
        r, n = rows.shape
        rows = jnp.max(rows.reshape(r // 2, 2, n), axis=1).astype(bf16)  # pool H
        ev = jnp.dot(rows, se_ref[...], preferred_element_type=f32)
        od = jnp.dot(rows, so_ref[...], preferred_element_type=f32)
        return jnp.maximum(ev, od)                                       # pool W

    y = x_ref[...].astype(f32).reshape(batch * h_in, wc_in)  # (B*32, 32*3)
    y = conv(y, t1_ref, b1_ref)                    # (B*32, 28*6)  rows 28..31 junk
    y = pool(y, s1e_ref, s1o_ref)                  # (B*16, 14*6)  rows 14..15 junk
    y = conv(y, t2_ref, b2_ref)                    # (B*16, 10*16) rows 10..15 junk
    y = pool(y, s2e_ref, s2o_ref)                  # (B*8,  5*16)  rows  5..7  junk

    # fc1 (+ folded torch-(C,H,W) flatten): z[b] = sum_j y[b, j, :] @ G1[j].
    # Row j of every image is selected with an iota mask so junk rows give 0.
    yb = y.astype(bf16)
    h_last = yb.shape[0] // batch                  # = 8
    row_j = jax.lax.broadcasted_iota(jnp.int32, (yb.shape[0], 1), 0) % h_last
    zrows = None
    for j in range(g1_ref.shape[0]):               # 5 valid rows
        d = jnp.dot(jnp.where(row_j == j, yb, jnp.zeros_like(yb)), g1_ref[j],
                    preferred_element_type=f32)
        zrows = d if zrows is None else zrows + d
    z = jnp.sum(zrows.reshape(batch, h_last, zrows.shape[-1]), axis=1)  # (B, 120)
    z = jnp.maximum(z + fb1_ref[...], 0.0)

    z = jnp.maximum(jnp.dot(z.astype(bf16), w2_ref[...],
                            preferred_element_type=f32) + fb2_ref[...], 0.0)
    z = jnp.dot(z.astype(bf16), w3_ref[...],
                preferred_element_type=f32) + fb3_ref[...]
    o_ref[...] = z                                                      # (B, 10)


def lenet5_forward(x_nchw, kp, *, block_b=16):
    """Forward pass matching LeNet5.forward; x_nchw: (N, 3, 32, 32) -> (N, 10)."""
    if _ROLL_TO_HIGH is None:
        _resolve_roll_convention()   # must happen outside jit (done in param init)

    n, c_in, h_in, w_in = x_nchw.shape
    b = max(1, min(block_b, n))
    n_pad = pl.cdiv(n, b) * b

    # NCHW -> NHWC row-flat (N, H, W*C) + bf16 cast in one small XLA relayout.
    x = (jnp.transpose(x_nchw, (0, 2, 3, 1))
         .astype(jnp.bfloat16)
         .reshape(n, h_in, w_in * c_in))
    if n_pad != n:
        x = jnp.pad(x, ((0, n_pad - n), (0, 0), (0, 0)))

    weights = tuple(kp[k] for k in _WEIGHT_ORDER)
    n_classes = kp["fb3"].shape[-1]

    def resident(a):                 # whole array, same block every grid step
        zeros = (0,) * a.ndim
        return pl.BlockSpec(a.shape, lambda i, _z=zeros: _z)

    grid_spec = pltpu.PrefetchScalarGridSpec(
        num_scalar_prefetch=0,
        grid=(n_pad // b,),                       # `b` images per grid step
        in_specs=[pl.BlockSpec((b, h_in, w_in * c_in), lambda i: (i, 0, 0))]
                 + [resident(a) for a in weights],
        out_specs=pl.BlockSpec((b, n_classes), lambda i: (i, 0)),
    )
    out = pl.pallas_call(
        _lenet5_kernel,
        out_shape=jax.ShapeDtypeStruct((n_pad, n_classes), jnp.float32),
        grid_spec=grid_spec,
        compiler_params=pltpu.CompilerParams(
            dimension_semantics=("parallel",),     # split batch blocks over TCs
            vmem_limit_bytes=32 * 1024 * 1024),
    )(x, *weights)
    return out[:n]


# ----------------------------------------------------------------------------
# Init-time weight preprocessing (all host-side numpy, done once).
# ----------------------------------------------------------------------------
def _toeplitz_rows(w_oihw, w_in):
    """Torch conv weight (Cout,Cin,KH,KW) -> (KH, Win*Cin, Wout*Cout)."""
    w = np.asarray(w_oihw, np.float32)
    cout, cin, kh, kw = w.shape
    w_out = w_in - kw + 1
    t = np.zeros((kh, w_in * cin, w_out * cout), np.float32)
    for dh in range(kh):
        for wo in range(w_out):
            for dw in range(kw):
                wi = wo + dw
                t[dh, wi * cin:(wi + 1) * cin,
                  wo * cout:(wo + 1) * cout] = w[:, :, dh, dw].T
    return jnp.asarray(t)


def _pool_select(w_in, c, parity):
    """(Win*C, (Win//2)*C) one-hot matrix selecting column group w = 2*w'+parity."""
    w_out = w_in // 2
    s = np.zeros((w_in * c, w_out * c), np.float32)
    eye = np.eye(c, dtype=np.float32)
    for wo in range(w_out):
        wi = 2 * wo + parity
        s[wi * c:(wi + 1) * c, wo * c:(wo + 1) * c] = eye
    return jnp.asarray(s)


def _fc1_rowdots(fw1_torch, c_feat=16, hw_feat=5):
    """Torch fc1 weight (120, 400 in (C,H,W) order) -> (H, W*C, 120)."""
    fw = np.asarray(fw1_torch, np.float32)
    n_out = fw.shape[0]
    g = np.zeros((hw_feat, hw_feat * c_feat, n_out), np.float32)
    for c in range(c_feat):
        for h in range(hw_feat):
            for w in range(hw_feat):
                g[h, w * c_feat + c, :] = fw[:, c * hw_feat * hw_feat + h * hw_feat + w]
    return jnp.asarray(g)


def convert_params_for_kernel(torch_params):
    _resolve_roll_convention()      # resolve roll direction before any jit trace
    (w1, b1), (w2, b2), (fw1, fb1), (fw2, fb2), (fw3, fb3) = torch_params
    bf16, f32 = jnp.bfloat16, jnp.float32
    return {
        # Matmul operands -> bf16 (f32 accumulation in-kernel); biases stay f32.
        "t1": _toeplitz_rows(w1, w_in=32).astype(bf16),   # (5, 96, 168)
        "b1": jnp.tile(b1, 28)[None, :].astype(f32),      # (1, 168)
        "s1e": _pool_select(28, 6, 0).astype(bf16),       # (168, 84)
        "s1o": _pool_select(28, 6, 1).astype(bf16),
        "t2": _toeplitz_rows(w2, w_in=14).astype(bf16),   # (5, 84, 160)
        "b2": jnp.tile(b2, 10)[None, :].astype(f32),      # (1, 160)
        "s2e": _pool_select(10, 16, 0).astype(bf16),      # (160, 80)
        "s2o": _pool_select(10, 16, 1).astype(bf16),
        "g1": _fc1_rowdots(fw1).astype(bf16),             # (5, 80, 120)
        "fb1": fb1[None, :].astype(f32),
        "w2": jnp.asarray(fw2).T.astype(bf16),            # (120, 84)
        "fb2": fb2[None, :].astype(f32),
        "w3": jnp.asarray(fw3).T.astype(bf16),            # (84, 10)
        "fb3": fb3[None, :].astype(f32),
    }


def init_torch_params(seed=0):
    """Deterministic parameters in PyTorch layouts (Conv2d OIHW, Linear (out,in))."""
    ks = jax.random.split(jax.random.PRNGKey(seed), 10)

    def uni(k, shape, fan_in):
        bound = 1.0 / float(fan_in) ** 0.5
        return jax.random.uniform(k, shape, jnp.float32, -bound, bound)

    w1 = uni(ks[0], (6, 3, 5, 5), 3 * 25);   b1 = uni(ks[1], (6,), 3 * 25)
    w2 = uni(ks[2], (16, 6, 5, 5), 6 * 25);  b2 = uni(ks[3], (16,), 6 * 25)
    fw1 = uni(ks[4], (120, 400), 400);       fb1 = uni(ks[5], (120,), 400)
    fw2 = uni(ks[6], (84, 120), 120);        fb2 = uni(ks[7], (84,), 120)
    fw3 = uni(ks[8], (10, 84), 84);          fb3 = uni(ks[9], (10,), 84)
    return ((w1, b1), (w2, b2), (fw1, fb1), (fw2, fb2), (fw3, fb3))


# ----------------------------------------------------------------------------
# Pure-JAX reference (for validating the fused kernel / weight transforms).
# ----------------------------------------------------------------------------
def reference_forward(x_nchw, torch_params):
    (w1, b1), (w2, b2), (fw1, fb1), (fw2, fb2), (fw3, fb3) = torch_params

    def conv_relu(x, w, b):
        y = jax.lax.conv_general_dilated(
            x, w, window_strides=(1, 1), padding="VALID",
            dimension_numbers=("NCHW", "OIHW", "NCHW"))
        return jax.nn.relu(y + b[None, :, None, None])

    def pool(x):
        n, c, h, w = x.shape
        return jnp.max(x.reshape(n, c, h // 2, 2, w // 2, 2), axis=(3, 5))

    x = pool(conv_relu(x_nchw, w1, b1))
    x = pool(conv_relu(x, w2, b2))
    x = x.reshape(x.shape[0], -1)                  # torch flatten: (C, H, W) order
    x = jax.nn.relu(x @ fw1.T + fb1)
    x = jax.nn.relu(x @ fw2.T + fb2)
    return x @ fw3.T + fb3


if __name__ == "__main__":
    torch_params = init_torch_params(seed=0)
    kparams = convert_params_for_kernel(torch_params)

    # LeNet5's Linear(16*5*5, 120) implies 3x32x32 inputs; batch=64 so the
    # batched grid (block_b=16 -> grid=(4,)) is actually exercised.
    x = jax.random.normal(jax.random.PRNGKey(0), (64, 3, 32, 32), jnp.float32)

    fwd = jax.jit(lambda inp: lenet5_forward(inp, kparams, block_b=16))
    out = jax.block_until_ready(fwd(x))

    assert out.shape == (64, 10), out.shape
    assert bool(jnp.all(jnp.isfinite(out)))

    # Cross-check vs. the XLA reference.  Loose tolerance: the kernel feeds bf16
    # operands to the MXU (f32 accumulation) and the f32 reference itself uses
    # bf16 passes on TPU.
    ref = reference_forward(x, torch_params)
    err = float(jnp.max(jnp.abs(out - ref)))
    assert err < 6e-2, f"max abs err vs reference: {err}"

    print("KERNEL_OK")
</pallas_src>

<mosaic_0001>
module attributes {stable_mosaic.version = 11 : i64} {
  func.func @probe(%arg0: memref<8x128xf32, #tpu.memory_space<vmem>>, %arg1: memref<8x128xf32, #tpu.memory_space<vmem>>) attributes {dimension_semantics = [], scalar_prefetch = 0 : i64, scratch_operands = 0 : i64, tpu.core_type = #tpu.core_type<tc>} {
    %c0 = arith.constant 0 : index
    %c0_0 = arith.constant 0 : index
    %0 = vector.load %arg0[%c0, %c0_0] : memref<8x128xf32, #tpu.memory_space<vmem>>, vector<8x128xf32>
    %c1_i32 = arith.constant 1 : i32
    %1 = tpu.dynamic_rotate %0 by %c1_i32 dim 0 : vector<8x128xf32>, i32 -> vector<8x128xf32>
    %c0_1 = arith.constant 0 : index
    %c0_2 = arith.constant 0 : index
    %2 = vector.load %arg1[%c0_1, %c0_2] : memref<8x128xf32, #tpu.memory_space<vmem>>, vector<8x128xf32>
    tpu.vector_store %arg1[%c0_1, %c0_2], %1 {strides = array<i32>} : memref<8x128xf32, #tpu.memory_space<vmem>>, vector<8x128xf32>,
    return
  }
}

</mosaic_0001>

<bundles_post_ra>
// kernel: tpu_custom_call.1
= control target key start
LH: loop header
LB: loop body
LE: loop exit
PB: predicated region body
PF: predicated region fallthrough
CT: control target
= control target key end

     0   :  { %6 = vsyncpa [#allocation3], 0  ;;  %s125_s0 = inlined_call_operand.hbm [shape: f32[8,128], index: 0, kind: input, shape index: {}]   ;;  %s126_s1 = inlined_call_operand.hbm [shape: f32[8,128], index: 1, kind: output, shape index: {}]  }
   0x1   :  { %7 = vsyncpa [#allocation4], 0  ;;  %s89_s6 = smov [#allocation2]   ;;  %s41_s10 = scalar_lea.hbm %s125_s0, 128 }
   0x2   :  { %s14_s7 = sshll.u32 %s89_s6, 4  ;;  %p42_p0 = scmp.ne.s32.totalorder %s125_s0, %s41_s10  ;;  %s15_s7 = int_to_ptr.vmem [resolvable:$true] %s14_s7 }
   0x3   :  { %p45_p1 = scmp.lt.u32.totalorder %s41_s10, %s125_s0 }
   0x5   :  { %p47_p2 = pnand %p45_p1, %p42_p0 }
   0x7   :  { %50 = shalt.err (!%p47_p2)
}
   0x8   :  { %s51_s15 = scalar_lea.vmem %s15_s7, 128  ;;  %p56_p4 = scmp.lt.s32.totalorder %s15_s7, %s15_s7 }
   0x9   :  { %p52_p3 = scmp.ne.s32.totalorder %s15_s7, %s51_s15  ;;  %p57_p5 = scmp.lt.s32.totalorder %s51_s15, %s51_s15 }
   0xb   :  { %p58_p6 = por %p57_p5, %p56_p4 }
   0xd   :  { %p59_p7 = pnand %p58_p6, %p52_p3 }
   0xf   :  { %62 = shalt.err (!%p59_p7)
}
  0x10   :  { %17 = dma.hbm_to_vmem [thread:$0]  %s125_s0, 128, %s15_s7, [#allocation3]  }
  0x11   :  { %85 = dma.done.wait [#allocation3], 128  }
  0x12   :  { %86 = vsyncadd [#allocation3], 4294967168  ;;  %s90_s18 = smov [#allocation5]   ;;  %v21_v0 = vld [vmem:[#allocation2] sm:$0xff] }
  0x13   :  { %s30_s19 = sshll.u32 %s90_s18, 4  ;;  %v22_v1 = vrot.slane %v21_v0, 7  ;;  %s31_s19 = int_to_ptr.vmem [resolvable:$true] %s30_s19 }
  0x14   :  { %s63_s20 = scalar_lea.vmem %s31_s19, 128  ;;  %p68_p9 = scmp.lt.s32.totalorder %s31_s19, %s31_s19 }
  0x15   :  { %23 = vst [vmem:[#allocation5] sm:$0xff] %v22_v1  ;;  %p64_p8 = scmp.ne.s32.totalorder %s31_s19, %s63_s20  ;;  %p69_p10 = scmp.lt.s32.totalorder %s63_s20, %s63_s20 }
  0x17   :  { %p70_p11 = por %p69_p10, %p68_p9 }
  0x19   :  { %p71_p12 = pnand %p70_p11, %p64_p8 }
  0x1b   :  { %74 = shalt.err (!%p71_p12)
}
  0x1c   :  { %s75_s23 = scalar_lea.hbm %s126_s1, 128 }
  0x1d   :  { %p76_p13 = scmp.ne.s32.totalorder %s126_s1, %s75_s23  ;;  %p79_p0 = scmp.lt.u32.totalorder %s75_s23, %s126_s1 }
  0x1f   :  { %p81_p1 = pnand %p79_p0, %p76_p13 }
  0x21   :  { %84 = shalt.err (!%p81_p1)
}
  0x22   :  { %33 = dma.vmem_to_hbm [thread:$0]  %s31_s19, 128, %s126_s1, [#allocation4]  }
  0x23   :  { %87 = dma.done.wait [#allocation4], 128  }
  0x24   :  { %88 = vsyncadd [#allocation4], 4294967168 }
  0x25   :  { %37 = vsyncpa [#allocation3], 1 }
  0x26   :  { %38 = vsyncpa [#allocation4], 1 }

</bundles_post_ra>
